<compile_context>
chip_gen: v7x
topology: tpu7x:2x2x1
jax: 0.10.0
libtpu: 0.0.40
codegen_flags: <defaults>
</compile_context>

<pallas_src>
import jax
import jax.numpy as jnp
from jax.experimental import pallas as pl
from jax.experimental.pallas import tpu as pltpu


def _mlp_kernel(xi_ref, xt_ref, w1i_ref, w1t_ref, b1_ref, w2_ref, b2_ref, o_ref):
    # xi_ref:  [TB, Di]  f32       xt_ref:  [TB, Dt]  f32
    # w1i_ref: [Di, H]   bf16      w1t_ref: [Dt, H]   bf16     b1_ref: [1, H]  f32
    # w2_ref:  [H, Cp]   bf16      b2_ref:  [1, Cp]   f32
    # o_ref:   [TB, Cp]  (Cp = num_classes padded to a multiple of 128)
    #
    # In-kernel bf16 cast of the activations (VPU, hidden under the MXU) instead of a
    # wrapper-side cast that would add a full HBM round trip.
    xi = xi_ref[...].astype(jnp.bfloat16)
    xt = xt_ref[...].astype(jnp.bfloat16)
    # Fused concat: fc1(concat(xi, xt)) == xi @ W1[:Di] + xt @ W1[Di:]
    h = jnp.dot(xi, w1i_ref[...], preferred_element_type=jnp.float32)
    h = h + jnp.dot(xt, w1t_ref[...], preferred_element_type=jnp.float32)
    h = jnp.maximum(h + b1_ref[...], 0.0)          # bias + ReLU in f32
    # Dropout(p=0.3) in eval mode == identity (no-op at inference).
    y = jnp.dot(h.astype(w2_ref.dtype), w2_ref[...],
                preferred_element_type=jnp.float32)
    o_ref[...] = (y + b2_ref[...]).astype(o_ref.dtype)


def pack_params_for_kernel(params, image_dim, lane=128):
    """One-time offline re-layout of PyTorch-style params:
       - split fc1's weight at the concat boundary (fuses torch.cat into the kernel),
       - cast matmul weights to bf16 for the MXU (biases stay f32, added post-accum),
       - zero-pad the class dim up to a multiple of 128 so output stores are lane-dense.
    """
    w1, b1, w2, b2 = params["w1"], params["b1"], params["w2"], params["b2"]
    H = w1.shape[1]
    C = w2.shape[1]
    cp = ((C + lane - 1) // lane) * lane
    return {
        "w1_img": w1[:image_dim].astype(jnp.bfloat16),                    # [Di, H]
        "w1_txt": w1[image_dim:].astype(jnp.bfloat16),                    # [Dt, H]
        "b1": b1.reshape(1, H).astype(jnp.float32),                        # [1, H]
        "w2": jnp.pad(w2, ((0, 0), (0, cp - C))).astype(jnp.bfloat16),     # [H, Cp]
        "b2": jnp.pad(b2.reshape(1, C), ((0, 0), (0, cp - C))).astype(jnp.float32),
        "num_classes": C,
    }


def _round_up(x, m):
    return ((x + m - 1) // m) * m


def _choose_batch_tile(B, block_b):
    """Pick (tb, Bp): tb a multiple of 16 (bf16 sublane tile), preferring a tile that
    divides the (16-rounded) batch so no wrapper-side activation padding is needed."""
    block_b = max(16, (block_b // 16) * 16)
    Bp = _round_up(B, 16)
    if Bp <= block_b:
        return Bp, Bp                              # single tile -> grid=(1,)
    # Prefer a divisor of Bp in [block_b/2, block_b] (no padding, fat tiles).
    for tb in range(block_b, block_b // 2 - 1, -16):
        if Bp % tb == 0:
            return tb, Bp
    # Fallback: pad the batch up to a multiple of block_b (ragged last tile).
    return block_b, _round_up(Bp, block_b)


def joint_classifier_forward(image_features, text_features, packed, *,
                             block_b=1024, out_dtype=jnp.float32):
    """image_features: [B, Di], text_features: [B, Dt]. Returns [B, num_classes]."""
    xi = image_features.astype(jnp.float32)
    xt = text_features.astype(jnp.float32)
    B, Di = xi.shape
    Dt = xt.shape[1]
    w1i, w1t, b1 = packed["w1_img"], packed["w1_txt"], packed["b1"]
    w2, b2 = packed["w2"], packed["b2"]
    H = w1i.shape[1]
    Cp = w2.shape[1]
    C = packed["num_classes"]

    tb, Bp = _choose_batch_tile(B, block_b)
    if Bp != B:
        pad = Bp - B
        xi = jnp.pad(xi, ((0, pad), (0, 0)))
        xt = jnp.pad(xt, ((0, pad), (0, 0)))
    grid = (Bp // tb,)

    out_itemsize = jnp.dtype(out_dtype).itemsize

    # VMEM budget: single-buffered weights/biases + double-buffered activation/output tiles.
    weight_bytes = (w1i.size + w1t.size + w2.size) * 2 + (b1.size + b2.size) * 4
    act_bytes = 2 * tb * (Di + Dt) * 4
    out_bytes = 2 * tb * Cp * out_itemsize
    vmem_limit = int(min(128 * 1024 * 1024,
                         max(weight_bytes + act_bytes + out_bytes + 4 * 1024 * 1024,
                             16 * 1024 * 1024)))

    flops = 2 * Bp * ((Di + Dt) * H + H * Cp)
    bytes_accessed = (
        xi.size * 4 + xt.size * 4                       # f32 activations in
        + w1i.size * 2 + w1t.size * 2 + w2.size * 2     # bf16 weights (fetched once)
        + b1.size * 4 + b2.size * 4                     # f32 biases
        + Bp * Cp * out_itemsize                        # output
    )

    resident = dict(pipeline_mode=pl.Buffered(buffer_count=1))  # fetched once, single buffer

    out = pl.pallas_call(
        _mlp_kernel,
        out_shape=jax.ShapeDtypeStruct((Bp, Cp), out_dtype),
        grid_spec=pl.GridSpec(
            grid=grid,
            in_specs=[
                pl.BlockSpec((tb, Di), lambda i: (i, 0)),            # image tile (pipelined)
                pl.BlockSpec((tb, Dt), lambda i: (i, 0)),            # text tile  (pipelined)
                pl.BlockSpec((Di, H), lambda i: (0, 0), **resident),  # grid-invariant weights:
                pl.BlockSpec((Dt, H), lambda i: (0, 0), **resident),  #   stay VMEM-resident,
                pl.BlockSpec((1, H), lambda i: (0, 0), **resident),   #   single-buffered
                pl.BlockSpec((H, Cp), lambda i: (0, 0), **resident),
                pl.BlockSpec((1, Cp), lambda i: (0, 0), **resident),
            ],
            out_specs=pl.BlockSpec((tb, Cp), lambda i: (i, 0)),
        ),
        compiler_params=pltpu.CompilerParams(
            # batch tiles are independent -> shard across TensorCores on v7x megacore
            dimension_semantics=("parallel",),
            vmem_limit_bytes=vmem_limit,
        ),
        cost_estimate=pl.CostEstimate(
            flops=flops, transcendentals=0, bytes_accessed=bytes_accessed),
    )(xi, xt, w1i, w1t, b1, w2, b2)

    if Bp != B or Cp != C:
        out = out[:B, :C]
    return out


def init_params(key, input_dim, hidden_dim, num_classes, dtype=jnp.float32):
    """Deterministic synthetic parameters matching nn.Linear shapes
    (stored transposed as [in, out] so the kernel computes y = x @ W + b)."""
    k1, k2, k3, k4 = jax.random.split(key, 4)
    s1 = 1.0 / jnp.sqrt(input_dim)
    s2 = 1.0 / jnp.sqrt(hidden_dim)
    return {
        "w1": jax.random.uniform(k1, (input_dim, hidden_dim), dtype, -s1, s1),
        "b1": jax.random.uniform(k2, (hidden_dim,), dtype, -s1, s1),
        "w2": jax.random.uniform(k3, (hidden_dim, num_classes), dtype, -s2, s2),
        "b2": jax.random.uniform(k4, (num_classes,), dtype, -s2, s2),
    }


def _reference(image_features, text_features, packed):
    # Pure-JAX reference matching the kernel's numerics (bf16 MXU operands, f32 accumulation).
    xi = image_features.astype(jnp.bfloat16).astype(jnp.float32)
    xt = text_features.astype(jnp.bfloat16).astype(jnp.float32)
    h = jnp.maximum(
        xi @ packed["w1_img"].astype(jnp.float32)
        + xt @ packed["w1_txt"].astype(jnp.float32)
        + packed["b1"], 0.0)
    h = h.astype(jnp.bfloat16).astype(jnp.float32)   # kernel feeds bf16 h to the 2nd matmul
    y = h @ packed["w2"].astype(jnp.float32) + packed["b2"]
    return y[:, :packed["num_classes"]]


if __name__ == "__main__":
    # Small shapes: batch=64 (single 64-row tile, grid=(1,)), image dim=16, text dim=16
    # -> input_dim=32, hidden_dim=256 (PyTorch default), num_classes=8.
    B, DI, DT = 64, 16, 16
    INPUT_DIM = DI + DT
    HIDDEN = 256
    NUM_CLASSES = 8

    key = jax.random.PRNGKey(0)
    k_img, k_txt, k_params = jax.random.split(key, 3)

    image_features = jax.random.normal(k_img, (B, DI), jnp.float32)
    text_features = jax.random.normal(k_txt, (B, DT), jnp.float32)
    params = init_params(k_params, INPUT_DIM, HIDDEN, NUM_CLASSES)
    packed = pack_params_for_kernel(params, image_dim=DI)

    out = joint_classifier_forward(image_features, text_features, packed)
    out = jax.block_until_ready(out)

    ref = _reference(image_features, text_features, packed)
    assert out.shape == (B, NUM_CLASSES)
    # bf16 MXU operands with f32 accumulation vs. a numerics-matched f32 reference.
    assert jnp.allclose(out, ref, atol=1e-2, rtol=1e-2), (
        float(jnp.max(jnp.abs(out - ref))))

    print("KERNEL_OK")
</pallas_src>

<mosaic_0001>
module attributes {stable_mosaic.version = 11 : i64} {
  func.func @_mlp_kernel(%arg0: i32, %arg1: memref<64x16xf32, #tpu.memory_space<vmem>>, %arg2: memref<64x16xf32, #tpu.memory_space<vmem>>, %arg3: memref<16x256xbf16, #tpu.memory_space<vmem>>, %arg4: memref<16x256xbf16, #tpu.memory_space<vmem>>, %arg5: memref<1x256xf32, #tpu.memory_space<vmem>>, %arg6: memref<256x128xbf16, #tpu.memory_space<vmem>>, %arg7: memref<1x128xf32, #tpu.memory_space<vmem>>, %arg8: memref<64x128xf32, #tpu.memory_space<vmem>>) attributes {dimension_semantics = [#tpu.dimension_semantics<parallel>], iteration_bounds = array<i64: 1>, scalar_prefetch = 0 : i64, scratch_operands = 0 : i64, tpu.core_type = #tpu.core_type<tc>, window_params = [{transform_indices = @transform_0, window_bounds = array<i64: 64, 16>}, {transform_indices = @transform_1, window_bounds = array<i64: 64, 16>}, {pipeline_mode = #tpu.pipeline_mode<synchronous>, transform_indices = @transform_2, window_bounds = array<i64: 16, 256>}, {pipeline_mode = #tpu.pipeline_mode<synchronous>, transform_indices = @transform_3, window_bounds = array<i64: 16, 256>}, {pipeline_mode = #tpu.pipeline_mode<synchronous>, transform_indices = @transform_4, window_bounds = array<i64: 1, 256>}, {pipeline_mode = #tpu.pipeline_mode<synchronous>, transform_indices = @transform_5, window_bounds = array<i64: 256, 128>}, {pipeline_mode = #tpu.pipeline_mode<synchronous>, transform_indices = @transform_6, window_bounds = array<i64: 1, 128>}, {transform_indices = @transform_7, window_bounds = array<i64: 64, 128>}]} {
    %c0 = arith.constant 0 : index
    %c0_0 = arith.constant 0 : index
    %0 = vector.load %arg1[%c0, %c0_0] : memref<64x16xf32, #tpu.memory_space<vmem>>, vector<64x16xf32>
    %1 = arith.truncf %0 : vector<64x16xf32> to vector<64x16xbf16>
    %c0_1 = arith.constant 0 : index
    %c0_2 = arith.constant 0 : index
    %2 = vector.load %arg2[%c0_1, %c0_2] : memref<64x16xf32, #tpu.memory_space<vmem>>, vector<64x16xf32>
    %3 = arith.truncf %2 : vector<64x16xf32> to vector<64x16xbf16>
    %c0_3 = arith.constant 0 : index
    %c0_4 = arith.constant 0 : index
    %4 = vector.load %arg3[%c0_3, %c0_4] : memref<16x256xbf16, #tpu.memory_space<vmem>>, vector<16x256xbf16>
    %cst = arith.constant dense<0.000000e+00> : vector<64x256xf32>
    %5 = tpu.matmul %1, %4, %cst {dimension_numbers = #tpu.dot_dimension_numbers<[1], [0], [0], [1], [0, 0, 1, 1], [], []>} : vector<64x16xbf16>, vector<16x256xbf16>, vector<64x256xf32> -> vector<64x256xf32>
    %c0_5 = arith.constant 0 : index
    %c0_6 = arith.constant 0 : index
    %6 = vector.load %arg4[%c0_5, %c0_6] : memref<16x256xbf16, #tpu.memory_space<vmem>>, vector<16x256xbf16>
    %cst_7 = arith.constant dense<0.000000e+00> : vector<64x256xf32>
    %7 = tpu.matmul %3, %6, %cst_7 {dimension_numbers = #tpu.dot_dimension_numbers<[1], [0], [0], [1], [0, 0, 1, 1], [], []>} : vector<64x16xbf16>, vector<16x256xbf16>, vector<64x256xf32> -> vector<64x256xf32>
    %8 = arith.addf %5, %7 : vector<64x256xf32>
    %c0_8 = arith.constant 0 : index
    %c0_9 = arith.constant 0 : index
    %9 = vector.load %arg5[%c0_8, %c0_9] : memref<1x256xf32, #tpu.memory_space<vmem>>, vector<1x256xf32>
    %10 = vector.broadcast %9 : vector<1x256xf32> to vector<64x256xf32>
    %11 = arith.addf %8, %10 : vector<64x256xf32>
    %cst_10 = arith.constant 0.000000e+00 : f32
    %12 = vector.broadcast %cst_10 : f32 to vector<64x256xf32>
    %13 = arith.maximumf %11, %12 : vector<64x256xf32>
    %14 = arith.truncf %13 : vector<64x256xf32> to vector<64x256xbf16>
    %c0_11 = arith.constant 0 : index
    %c0_12 = arith.constant 0 : index
    %15 = vector.load %arg6[%c0_11, %c0_12] : memref<256x128xbf16, #tpu.memory_space<vmem>>, vector<256x128xbf16>
    %cst_13 = arith.constant dense<0.000000e+00> : vector<64x128xf32>
    %16 = tpu.matmul %14, %15, %cst_13 {dimension_numbers = #tpu.dot_dimension_numbers<[1], [0], [0], [1], [0, 0, 1, 1], [], []>} : vector<64x256xbf16>, vector<256x128xbf16>, vector<64x128xf32> -> vector<64x128xf32>
    %c0_14 = arith.constant 0 : index
    %c0_15 = arith.constant 0 : index
    %17 = vector.load %arg7[%c0_14, %c0_15] : memref<1x128xf32, #tpu.memory_space<vmem>>, vector<1x128xf32>
    %18 = vector.broadcast %17 : vector<1x128xf32> to vector<64x128xf32>
    %19 = arith.addf %16, %18 : vector<64x128xf32>
    %c0_16 = arith.constant 0 : index
    %c0_17 = arith.constant 0 : index
    %20 = vector.load %arg8[%c0_16, %c0_17] : memref<64x128xf32, #tpu.memory_space<vmem>>, vector<64x128xf32>
    tpu.vector_store %arg8[%c0_16, %c0_17], %19 {strides = array<i32>} : memref<64x128xf32, #tpu.memory_space<vmem>>, vector<64x128xf32>,
    return
  }
  func.func @transform_0(%arg0: i32) -> (i32, i32) {
    %c0_i32 = arith.constant 0 : i32
    %c0_i32_0 = arith.constant 0 : i32
    return %arg0, %c0_i32 : i32, i32
  }
  func.func @transform_1(%arg0: i32) -> (i32, i32) {
    %c0_i32 = arith.constant 0 : i32
    %c0_i32_0 = arith.constant 0 : i32
    return %arg0, %c0_i32 : i32, i32
  }
  func.func @transform_2(%arg0: i32) -> (i32, i32) {
    %c0_i32 = arith.constant 0 : i32
    %c0_i32_0 = arith.constant 0 : i32
    %c0_i32_1 = arith.constant 0 : i32
    return %c0_i32, %c0_i32_0 : i32, i32
  }
  func.func @transform_3(%arg0: i32) -> (i32, i32) {
    %c0_i32 = arith.constant 0 : i32
    %c0_i32_0 = arith.constant 0 : i32
    %c0_i32_1 = arith.constant 0 : i32
    return %c0_i32, %c0_i32_0 : i32, i32
  }
  func.func @transform_4(%arg0: i32) -> (i32, i32) {
    %c0_i32 = arith.constant 0 : i32
    %c0_i32_0 = arith.constant 0 : i32
    %c0_i32_1 = arith.constant 0 : i32
    return %c0_i32, %c0_i32_0 : i32, i32
  }
  func.func @transform_5(%arg0: i32) -> (i32, i32) {
    %c0_i32 = arith.constant 0 : i32
    %c0_i32_0 = arith.constant 0 : i32
    %c0_i32_1 = arith.constant 0 : i32
    return %c0_i32, %c0_i32_0 : i32, i32
  }
  func.func @transform_6(%arg0: i32) -> (i32, i32) {
    %c0_i32 = arith.constant 0 : i32
    %c0_i32_0 = arith.constant 0 : i32
    %c0_i32_1 = arith.constant 0 : i32
    return %c0_i32, %c0_i32_0 : i32, i32
  }
  func.func @transform_7(%arg0: i32) -> (i32, i32) {
    %c0_i32 = arith.constant 0 : i32
    %c0_i32_0 = arith.constant 0 : i32
    return %arg0, %c0_i32 : i32, i32
  }
}

</mosaic_0001>

<bundles_post_ra>
// kernel: tpu_custom_call.1
= control target key start
LH: loop header
LB: loop body
LE: loop exit
PB: predicated region body
PF: predicated region fallthrough
CT: control target
= control target key end

     0   :  { %v658_v2 = vmov 0   ;;  %vm66_vm0 = vcmask 130048   ;;  %s844_s0 = inlined_call_operand.vmem [shape: f32[64,16], index: 0, kind: input, shape index: {}]   ;;  %s845_s1 = inlined_call_operand.vmem [shape: f32[64,16], index: 1, kind: input, shape index: {}]   ;;  %s846_s2 = inlined_call_operand.vmem [shape: bf16[16,256], index: 2, kind: input, shape index: {}]   ;;  %s847_s3 = inlined_call_operand.vmem [shape: bf16[16,256], index: 3, kind: input, shape index: {}]   ;;  %s848_s4 = inlined_call_operand.vmem [shape: f32[1,256], index: 4, kind: input, shape index: {}]   ;;  %s849_s5 = inlined_call_operand.vmem [shape: bf16[256,128], index: 5, kind: input, shape index: {}]   ;;  %s850_s6 = inlined_call_operand.vmem [shape: f32[1,128], index: 6, kind: input, shape index: {}]   ;;  %s851_s7 = inlined_call_operand.hbm [shape: f32[64,128], index: 7, kind: output, shape index: {}]  }
   0x1   :  { %v612_v0 = vld [vmem:[%s847_s3 + $0x4] ss:$8 sps:$4 sm:$0xff]   ;;  %v614_v1 = vld [vmem:[%s847_s3] ss:$8 sps:$4 sm:$0xff]   ;;  %111 = vmatprep.mubr.bf16.mxu0 %v658_v2  ;;  %v42_v8 = vld [vmem:[%s845_s1 + $0x10] sm:$0xff] }
   0x2   :  { %v40_v3 = vld [vmem:[%s845_s1] sm:$0xff]  ;;  %v41_v4 = vld [vmem:[%s845_s1 + $0x8] sm:$0xff]  ;;  %79 = vmatprep.subr.bf16.mxu0 %v612_v0  ;;  %v43_v9 = vld [vmem:[%s845_s1 + $0x18] sm:$0xff] }
   0x3   :  { %v48_v5 = vpack.c.bf16 %v41_v4, %v40_v3  ;;  %80 = vmatpush1.bf16.msra.mxu0 %v614_v1  ;;  %v615_v6 = vld [vmem:[%s846_s2] ss:$8 sps:$4 sm:$0xff]   ;;  %v617_v7 = vld [vmem:[%s846_s2 + $0x4] ss:$8 sps:$4 sm:$0xff]   ;;  %v49_v12 = vpack.c.bf16 %v43_v9, %v42_v8  ;;  %v622_v15 = vld [vmem:[%s849_s5 + $0x50] sm:$0xff]  }
   0x4   :  { %174 = vmatprep.subr.bf16.mxu0 %v617_v7  ;;  %v618_v10 = vld [vmem:[%s849_s5 + $0x40] sm:$0xff]   ;;  %v620_v13 = vld [vmem:[%s849_s5 + $0x48] sm:$0xff]   ;;  %v623_v18 = vld [vmem:[%s849_s5 + $0x10] sm:$0xff]  }
   0x5   :  { %v619_v11 = vld [vmem:[%s849_s5] sm:$0xff]   ;;  %552 = vmatprep.subr.bf16.mxu1 %v618_v10  ;;  %v621_v14 = vld [vmem:[%s849_s5 + $0x8] sm:$0xff]   ;;  %v624_v19 = vld [vmem:[%s849_s5 + $0x58] sm:$0xff]  }
   0x6   :  { %525 = vmatmul.mubr.msk.bf16.vlgmr.msra.gmra.mrb[0].mxu0 %vm66_vm0, %v48_v5  ;;  %553 = vmatpush3.bf16.msra.mxu1 %v619_v11  ;;  %v44_v16 = vld [vmem:[%s845_s1 + $0x20] sm:$0xff]  ;;  %v45_v17 = vld [vmem:[%s845_s1 + $0x28] sm:$0xff]  ;;  %v625_v20 = vld [vmem:[%s849_s5 + $0x18] sm:$0xff]  }
   0x7   :  { %175 = vmatpush1.bf16.msra.mxu0 %v615_v6  ;;  %121 = vmatprep.mubr.bf16.mxu0 %v658_v2  ;;  %v50_v21 = vpack.c.bf16 %v45_v17, %v44_v16  ;;  %v626_v22 = vld [vmem:[%s849_s5 + $0x60] sm:$0xff]  }
   0x8   :  { %554 = vmatprep.subr.bf16.mxu1 %v620_v13 }
   0xa   :  { %555 = vmatpush3.bf16.msra.mxu1 %v621_v14 }
   0xb   :  { %556 = vmatprep.subr.bf16.mxu1 %v622_v15 }
   0xe   :  { %526 = vmatmul.mubr.msk.bf16.gmra.mrb[4].mxu0 %vm66_vm0, %v49_v12  ;;  %557 = vmatpush3.bf16.msra.mxu1 %v623_v18 }
   0xf   :  { %131 = vmatprep.mubr.bf16.mxu0 %v658_v2  ;;  %558 = vmatprep.subr.bf16.mxu1 %v624_v19 }
  0x16   :  { %527 = vmatmul.mubr.msk.bf16.gmra.mrb[8].mxu0 %vm66_vm0, %v50_v21 }
  0x17   :  { %12 = vsyncpa [#allocation3], 0  ;;  %141 = vmatprep.mubr.bf16.mxu0 %v658_v2  ;;  %v46_v23 = vld [vmem:[%s845_s1 + $0x30] sm:$0xff]  ;;  %v47_v24 = vld [vmem:[%s845_s1 + $0x38] sm:$0xff]  ;;  %559 = vmatpush3.bf16.msra.mxu1 %v625_v20  ;;  %v249_v45 = vlaneseq }
  0x18   :  { %v627_v25 = vld [vmem:[%s849_s5 + $0x20] sm:$0xff]   ;;  %560 = vmatprep.subr.bf16.mxu1 %v626_v22  ;;  %v628_v26 = vld [vmem:[%s849_s5 + $0x68] sm:$0xff]   ;;  %v51_v27 = vpack.c.bf16 %v47_v24, %v46_v23  ;;  %v30_v31 = vld [vmem:[%s844_s0 + $0x10] sm:$0xff] }
  0x19   :  { %v28_v28 = vld [vmem:[%s844_s0] sm:$0xff]  ;;  %v29_v29 = vld [vmem:[%s844_s0 + $0x8] sm:$0xff]  ;;  %v31_v32 = vld [vmem:[%s844_s0 + $0x18] sm:$0xff]  ;;  %v250_v46 = vshrl.u32 %v249_v45, 7 }
  0x1a   :  { %v36_v30 = vpack.c.bf16 %v29_v29, %v28_v28  ;;  %v37_v33 = vpack.c.bf16 %v31_v32, %v30_v31  ;;  %v32_v34 = vld [vmem:[%s844_s0 + $0x20] sm:$0xff]  ;;  %v33_v35 = vld [vmem:[%s844_s0 + $0x28] sm:$0xff]  ;;  %v34_v37 = vld [vmem:[%s844_s0 + $0x30] sm:$0xff] }
  0x1b   :  { %561 = vmatpush3.bf16.msra.mxu1 %v627_v25  ;;  %v38_v36 = vpack.c.bf16 %v33_v35, %v32_v34  ;;  %v35_v38 = vld [vmem:[%s844_s0 + $0x38] sm:$0xff]  ;;  %v629_v40 = vld [vmem:[%s849_s5 + $0x28] sm:$0xff]   ;;  %v630_v41 = vld [vmem:[%s849_s5 + $0x70] sm:$0xff]   ;;  %v251_v47 = vsub.s32 0, %v250_v46  ;;  %v255_v49 = vsub.s32 1, %v250_v46 }
  0x1c   :  { %562 = vmatprep.subr.bf16.mxu1 %v628_v26  ;;  %v39_v39 = vpack.c.bf16 %v35_v38, %v34_v37  ;;  %v631_v42 = vld [vmem:[%s849_s5 + $0x30] sm:$0xff]   ;;  %v632_v43 = vld [vmem:[%s849_s5 + $0x78] sm:$0xff]   ;;  %v247_v48 = vld [vmem:[%s848_s4] sm:$0x3] }
  0x1d   :  { %v633_v44 = vld [vmem:[%s849_s5 + $0x38] sm:$0xff]   ;;  %v252_v50 = vrot.slane %v247_v48, %v251_v47  ;;  %v256_v51 = vrot.slane %v247_v48, %v255_v49  ;;  %v535_v45 = vld [vmem:[%s850_s6] ss:$0 sm:$0xff]  ;;  %s659_s6 = smov [#allocation2]  }
  0x1e   :  { %528 = vmatmul.mubr.msk.bf16.gmra.mrb[12].mxu0 %vm66_vm0, %v51_v27  ;;  %s512_s21 = sshll.u32 %s659_s6, 4  ;;  %s513_s21 = int_to_ptr.vmem [resolvable:$true] %s512_s21 }
  0x1f   :  { %206 = vmatprep.mubr.bf16.mxu0 %v658_v2  ;;  %563 = vmatpush3.bf16.msra.mxu1 %v629_v40  ;;  %s634_s1 = scalar_lea.vmem %s513_s21, 1024  ;;  %p639_p1 = scmp.lt.s32.totalorder %s513_s21, %s513_s21 }
  0x20   :  { %564 = vmatprep.subr.bf16.mxu1 %v630_v41  ;;  %p635_p0 = scmp.ne.s32.totalorder %s513_s21, %s634_s1  ;;  %p640_p2 = scmp.lt.s32.totalorder %s634_s1, %s634_s1 }
  0x22   :  { %p641_p3 = por %p640_p2, %p639_p1 }
  0x23   :  { %565 = vmatpush3.bf16.msra.mxu1 %v631_v42 }
  0x24   :  { %566 = vmatprep.subr.bf16.mxu1 %v632_v43  ;;  %p642_p4 = pnand %p641_p3, %p635_p0 }
  0x26   :  { %531 = vmatmul.mubr.msk.bf16.vlgmr.msra.gmra.mrb[0].mxu0 %vm66_vm0, %v36_v30 }
  0x27   :  { %216 = vmatprep.mubr.bf16.mxu0 %v658_v2  ;;  %567 = vmatpush3.bf16.msra.mxu1 %v633_v44 }
  0x2e   :  { %532 = vmatmul.mubr.msk.bf16.gmra.mrb[4].mxu0 %vm66_vm0, %v37_v33 }
  0x2f   :  { %226 = vmatprep.mubr.bf16.mxu0 %v658_v2 }
  0x36   :  { %533 = vmatmul.mubr.msk.bf16.gmra.mrb[8].mxu0 %vm66_vm0, %v38_v36 }
  0x37   :  { %236 = vmatprep.mubr.bf16.mxu0 %v658_v2 }
  0x3e   :  { %534 = vmatmul.mubr.msk.bf16.gmra.mrb[12].mxu0 %vm66_vm0, %v39_v39 }
  0xf9   :  { %v208_v52 = vpop.f32.mrb[0].mxu0 }
  0xfa   :  { %v259_v53 = vadd.f32 %v252_v50, %v208_v52  ;;  %v210_v54 = vpop.f32.mrb[1].mxu0 }
  0xfb   :  { %v260_v55 = vadd.f32 %v256_v51, %v210_v54  ;;  %v212_v56 = vpop.f32.mrb[2].mxu0 }
  0xfc   :  { %v261_v57 = vadd.f32 %v252_v50, %v212_v56  ;;  %v214_v58 = vpop.f32.mrb[3].mxu0  ;;  %v275_v60 = vmax.f32 %v259_v53, 0.0 }
  0xfd   :  { %v262_v59 = vadd.f32 %v256_v51, %v214_v58  ;;  %v276_v62 = vmax.f32 %v260_v55, 0.0 }
  0xfe   :  { %v277_v61 = vmax.f32 %v261_v57, 0.0 }
  0xff   :  { %v278_v63 = vmax.f32 %v262_v59, 0.0 }
 0x100   :  { %v291_v0 = vpack.c.bf16 %v277_v61, %v275_v60 }
 0x101   :  { %v218_v1 = vpop.f32.mrb[4].mxu0  ;;  %v292_v2 = vpack.c.bf16 %v278_v63, %v276_v62 }
 0x102   :  { %v263_v3 = vadd.f32 %v252_v50, %v218_v1  ;;  %v220_v4 = vpop.f32.mrb[5].mxu0 }
 0x103   :  { %v264_v5 = vadd.f32 %v256_v51, %v220_v4  ;;  %v222_v6 = vpop.f32.mrb[6].mxu0  ;;  %466 = vmatprep.mubr.bf16.mxu1 %v292_v2 }
 0x104   :  { %v265_v7 = vadd.f32 %v252_v50, %v222_v6  ;;  %v224_v8 = vpop.f32.mrb[7].mxu0  ;;  %467 = vmatmul.mubr.bf16.vlgmr.msra.gmra.mrb[0].mxu1 %v291_v0  ;;  %v279_v10 = vmax.f32 %v263_v3, 0.0 }
 0x105   :  { %v266_v9 = vadd.f32 %v256_v51, %v224_v8  ;;  %v280_v12 = vmax.f32 %v264_v5, 0.0 }
 0x106   :  { %v281_v11 = vmax.f32 %v265_v7, 0.0 }
 0x107   :  { %v282_v13 = vmax.f32 %v266_v9, 0.0 }
 0x108   :  { %v293_v14 = vpack.c.bf16 %v281_v11, %v279_v10 }
 0x109   :  { %v294_v15 = vpack.c.bf16 %v282_v13, %v280_v12  ;;  %v228_v16 = vpop.f32.mrb[8].mxu0 }
 0x10a   :  { %v267_v17 = vadd.f32 %v252_v50, %v228_v16  ;;  %v230_v18 = vpop.f32.mrb[9].mxu0 }
 0x10b   :  { %v268_v19 = vadd.f32 %v256_v51, %v230_v18  ;;  %v232_v20 = vpop.f32.mrb[10].mxu0  ;;  %474 = vmatprep.mubr.bf16.mxu1 %v294_v15 }
 0x10c   :  { %v269_v21 = vadd.f32 %v252_v50, %v232_v20  ;;  %v234_v22 = vpop.f32.mrb[11].mxu0  ;;  %475 = vmatmul.mubr.bf16.gmra.mrb[4].mxu1 %v293_v14  ;;  %v283_v24 = vmax.f32 %v267_v17, 0.0 }
 0x10d   :  { %v270_v23 = vadd.f32 %v256_v51, %v234_v22  ;;  %v284_v26 = vmax.f32 %v268_v19, 0.0 }
 0x10e   :  { %v285_v25 = vmax.f32 %v269_v21, 0.0 }
 0x10f   :  { %v286_v27 = vmax.f32 %v270_v23, 0.0 }
 0x110   :  { %v295_v28 = vpack.c.bf16 %v285_v25, %v283_v24 }
 0x111   :  { %v296_v29 = vpack.c.bf16 %v286_v27, %v284_v26  ;;  %v238_v30 = vpop.f32.mrb[12].mxu0 }
 0x112   :  { %v271_v31 = vadd.f32 %v252_v50, %v238_v30  ;;  %v240_v32 = vpop.f32.mrb[13].mxu0 }
 0x113   :  { %v272_v33 = vadd.f32 %v256_v51, %v240_v32  ;;  %v242_v34 = vpop.f32.mrb[14].mxu0  ;;  %482 = vmatprep.mubr.bf16.mxu1 %v296_v29 }
 0x114   :  { %v273_v35 = vadd.f32 %v252_v50, %v242_v34  ;;  %v244_v36 = vpop.f32.mrb[15].mxu0  ;;  %483 = vmatmul.mubr.bf16.gmra.mrb[8].mxu1 %v295_v28  ;;  %v287_v38 = vmax.f32 %v271_v31, 0.0 }
 0x115   :  { %v274_v37 = vadd.f32 %v256_v51, %v244_v36  ;;  %v288_v40 = vmax.f32 %v272_v33, 0.0 }
 0x116   :  { %v289_v39 = vmax.f32 %v273_v35, 0.0 }
 0x117   :  { %v290_v41 = vmax.f32 %v274_v37, 0.0 }
 0x118   :  { %v297_v42 = vpack.c.bf16 %v289_v39, %v287_v38 }
 0x119   :  { %v298_v43 = vpack.c.bf16 %v290_v41, %v288_v40 }
 0x11b   :  { %490 = vmatprep.mubr.bf16.mxu1 %v298_v43 }
 0x11c   :  { %491 = vmatmul.mubr.bf16.gmra.mrb[12].mxu1 %v297_v42 }
 0x1d7   :  { %v568_v44 = vpop.f32.mrb[0].mxu1 }
 0x1d8   :  { %v569_v46 = vpop.f32.mrb[1].mxu1 }
 0x1d9   :  { %v570_v47 = vadd.f32 %v569_v46, %v568_v44  ;;  %v571_v48 = vpop.f32.mrb[2].mxu1 }
 0x1da   :  { %v572_v49 = vpop.f32.mrb[3].mxu1 }
 0x1db   :  { %v469_v50 = vadd.f32 %v570_v47, %v535_v45  ;;  %v573_v52 = vadd.f32 %v572_v49, %v571_v48 }
 0x1dd   :  { %499 = vst [vmem:[#allocation2] sm:$0xff] %v469_v50  ;;  %v472_v51 = vadd.f32 %v573_v52, %v535_v45 }
 0x1df   :  { %500 = vst [vmem:[#allocation2 + $0x8] sm:$0xff] %v472_v51  ;;  %v574_v53 = vpop.f32.mrb[4].mxu1 }
 0x1e0   :  { %v575_v54 = vpop.f32.mrb[5].mxu1 }
 0x1e1   :  { %v576_v55 = vadd.f32 %v575_v54, %v574_v53  ;;  %v577_v56 = vpop.f32.mrb[6].mxu1 }
 0x1e2   :  { %v578_v57 = vpop.f32.mrb[7].mxu1 }
 0x1e3   :  { %v477_v58 = vadd.f32 %v576_v55, %v535_v45  ;;  %v579_v59 = vadd.f32 %v578_v57, %v577_v56 }
 0x1e5   :  { %501 = vst [vmem:[#allocation2 + $0x10] sm:$0xff] %v477_v58  ;;  %v480_v60 = vadd.f32 %v579_v59, %v535_v45 }
 0x1e7   :  { %502 = vst [vmem:[#allocation2 + $0x18] sm:$0xff] %v480_v60  ;;  %v580_v61 = vpop.f32.mrb[8].mxu1 }
 0x1e8   :  { %v581_v62 = vpop.f32.mrb[9].mxu1 }
 0x1e9   :  { %v582_v63 = vadd.f32 %v581_v62, %v580_v61  ;;  %v583_v0 = vpop.f32.mrb[10].mxu1 }
 0x1ea   :  { %v584_v1 = vpop.f32.mrb[11].mxu1 }
 0x1eb   :  { %v485_v2 = vadd.f32 %v582_v63, %v535_v45  ;;  %v585_v3 = vadd.f32 %v584_v1, %v583_v0 }
 0x1ed   :  { %503 = vst [vmem:[#allocation2 + $0x20] sm:$0xff] %v485_v2  ;;  %v488_v4 = vadd.f32 %v585_v3, %v535_v45 }
 0x1ef   :  { %504 = vst [vmem:[#allocation2 + $0x28] sm:$0xff] %v488_v4  ;;  %v586_v5 = vpop.f32.mrb[12].mxu1 }
 0x1f0   :  { %v587_v6 = vpop.f32.mrb[13].mxu1 }
 0x1f1   :  { %v588_v7 = vadd.f32 %v587_v6, %v586_v5  ;;  %v589_v8 = vpop.f32.mrb[14].mxu1 }
 0x1f2   :  { %v590_v9 = vpop.f32.mrb[15].mxu1 }
 0x1f3   :  { %v493_v10 = vadd.f32 %v588_v7, %v535_v45  ;;  %v591_v11 = vadd.f32 %v590_v9, %v589_v8 }
 0x1f5   :  { %505 = vst [vmem:[#allocation2 + $0x30] sm:$0xff] %v493_v10  ;;  %v496_v12 = vadd.f32 %v591_v11, %v535_v45 }
 0x1f7   :  { %506 = vst [vmem:[#allocation2 + $0x38] sm:$0xff] %v496_v12 }
 0x1f8   :  { %645 = shalt.err (!%p642_p4)
}
 0x1f9   :  { %s646_s24 = scalar_lea.hbm %s851_s7, 1024 }
 0x1fa   :  { %p647_p5 = scmp.ne.s32.totalorder %s851_s7, %s646_s24  ;;  %p650_p6 = scmp.lt.u32.totalorder %s646_s24, %s851_s7 }
 0x1fc   :  { %p652_p7 = pnand %p650_p6, %p647_p5 }
 0x1fe   :  { %655 = shalt.err (!%p652_p7)
}
 0x1ff   :  { %s660_s29 = smov 128   ;;  %s661_s30 = smov 8  }
 0x200   :  { %518 = dma.vmem_to_hbm [thread:$0]  %s513_s21, 1024, %s851_s7, [#allocation3], %s660_s29, %s660_s29, %s661_s30  }
 0x201   :  { %656 = dma.done.wait [#allocation3], 1024  }
 0x202   :  { %657 = vsyncadd [#allocation3], 4294966272 }
 0x203   :  { %522 = vsyncpa [#allocation3], 1 }

</bundles_post_ra>
